<compile_context>
chip_gen: v7x
topology: tpu7x:2x2x1
jax: 0.10.0
libtpu: 0.0.40
codegen_flags: <defaults>
</compile_context>

<pallas_src>
import functools
import math

import jax
import jax.numpy as jnp
from jax.experimental import pallas as pl
from jax.experimental.pallas import tpu as pltpu

BN_EPS = 1e-5
VMEM_LIMIT = 32 * 1024 * 1024  # comfortably above scoped defaults, well under v7x 64 MiB


def _round_up(x, m):
    return ((x + m - 1) // m) * m


# ---------------------------------------------------------------------------
# Pallas kernels
# ---------------------------------------------------------------------------

def _mm_single_kernel(*refs, relu, has_bias):
    """Single-K-tile matmul: out = act(A @ B (+ bias)); no scratch accumulator."""
    if has_bias:
        a_ref, b_ref, bias_ref, o_ref = refs
    else:
        a_ref, b_ref, o_ref = refs
        bias_ref = None
    y = jnp.dot(a_ref[...], b_ref[...], preferred_element_type=jnp.float32)
    if has_bias:
        y = y + bias_ref[...]
    if relu:
        y = jnp.maximum(y, 0.0)
    o_ref[...] = y.astype(o_ref.dtype)


def _mm_multi_kernel(*refs, relu, has_bias):
    """K-tiled matmul: acc += A @ B over the K grid axis; epilogue on the last step."""
    if has_bias:
        a_ref, b_ref, bias_ref, o_ref, acc_ref = refs
    else:
        a_ref, b_ref, o_ref, acc_ref = refs
        bias_ref = None

    @pl.when(pl.program_id(2) == 0)
    def _():
        acc_ref[...] = jnp.zeros_like(acc_ref)

    acc_ref[...] += jnp.dot(a_ref[...], b_ref[...],
                            preferred_element_type=jnp.float32)

    @pl.when(pl.program_id(2) == pl.num_programs(2) - 1)
    def _():
        y = acc_ref[...]
        if has_bias:
            y = y + bias_ref[...]
        if relu:
            y = jnp.maximum(y, 0.0)
        o_ref[...] = y.astype(o_ref.dtype)


def _conv3x3_wide_kernel(*refs, wp, tm, relu, has_residual, res_shift, single_m):
    """Direct 3x3 stride-1 pad-1 conv on the 'wide' flattened padded image.

    x_ref   : (1, RPHYS, Cin)  resident padded image (flat rows), bf16
    w_ref   : (3, 3*Cin, Cout) BN-folded weights, kw taps concatenated along K, bf16
    mask_ref: (tm, 1)          1.0 on valid output rows, 0.0 on halo rows, f32
    res_ref : (1, RPHYS, Cout) optional residual (wide layout), bf16
    o_ref   : (1, tm, Cout)    output tile (wide layout of the NEXT conv's input)
    """
    if has_residual:
        x_ref, w_ref, mask_ref, res_ref, o_ref = refs
    else:
        x_ref, w_ref, mask_ref, o_ref = refs
        res_ref = None

    if single_m:
        base = 0
    else:
        base = pl.multiple_of(pl.program_id(1) * tm, tm)

    acc = None
    for di in range(3):
        a = jnp.concatenate(
            [x_ref[0, pl.ds(base + di * wp + dj, tm), :] for dj in range(3)],
            axis=-1)                                             # (tm, 3*Cin) bf16
        d = jnp.dot(a, w_ref[di], preferred_element_type=jnp.float32)
        acc = d if acc is None else acc + d                      # SSA accumulation

    if has_residual:
        acc = acc + res_ref[0, pl.ds(base + res_shift, tm), :].astype(jnp.float32)
    if relu:
        acc = jnp.maximum(acc, 0.0)
    acc = jnp.where(mask_ref[...] > 0.0, acc, 0.0)               # zero halo rows exactly
    o_ref[0] = acc.astype(o_ref.dtype)


def _max9_kernel(x_ref, o_ref):
    # x: (9, tm, C) window-stacked tile -> elementwise max over the 9 windows.
    r = x_ref[0]
    for k in range(1, 9):
        r = jnp.maximum(r, x_ref[k])
    o_ref[...] = r


def _gavg_kernel(x_ref, o_ref):
    # x: (1, H*W, C) -> mean over the spatial axis in f32.
    o_ref[...] = jnp.mean(x_ref[...].astype(jnp.float32), axis=1, keepdims=True)


# ---------------------------------------------------------------------------
# Tiled matmul wrapper (im2col-path convs + FC): bf16 operands, f32 accumulate.
# ---------------------------------------------------------------------------

def matmul_bias_act(a, b, bias=None, relu=False, out_dtype=jnp.bfloat16):
    """out = act((a @ b) [+ bias]); a:(M,K) b:(K,N) bias:(N,) or None."""
    M, K = a.shape
    K2, N = b.shape
    assert K == K2
    a = a.astype(jnp.bfloat16)
    b = b.astype(jnp.bfloat16)
    has_bias = bias is not None

    # Large M tiles to amortize per-grid-step overhead.
    if M <= 2048:
        Mp = _round_up(M, 8)
        tm = Mp
    else:
        tm = 1024
        Mp = _round_up(M, tm)
    # N tiling (minor: full if <=512, else 256-wide lane-dense tiles).
    if N <= 512:
        Np, tn = N, N
    else:
        tn = 256
        Np = _round_up(N, tn)
    # K: pad to a multiple of 16 (bf16 second-minor packing), single tile up to 2560.
    Kp = _round_up(K, 16)
    if Kp <= 2560:
        tk = Kp
    else:
        tk = 512
        Kp = _round_up(K, tk)

    a_p = a if (Mp == M and Kp == K) else jnp.pad(a, ((0, Mp - M), (0, Kp - K)))
    b_p = b if (Kp == K and Np == N) else jnp.pad(b, ((0, Kp - K), (0, Np - N)))
    args = [a_p, b_p]

    multi_k = (Kp // tk) > 1
    if multi_k:
        grid = (Mp // tm, Np // tn, Kp // tk)
        in_specs = [
            pl.BlockSpec((tm, tk), lambda i, j, k: (i, k)),
            pl.BlockSpec((tk, tn), lambda i, j, k: (k, j)),
        ]
        if has_bias:
            in_specs.append(pl.BlockSpec((1, tn), lambda i, j, k: (0, j)))
        out_spec = pl.BlockSpec((tm, tn), lambda i, j, k: (i, j))
        kernel = functools.partial(_mm_multi_kernel, relu=relu, has_bias=has_bias)
        scratch = [pltpu.VMEM((tm, tn), jnp.float32)]
        sem = ("parallel", "parallel", "arbitrary")
    else:
        grid = (Mp // tm, Np // tn)
        in_specs = [
            pl.BlockSpec((tm, Kp), lambda i, j: (i, 0)),
            pl.BlockSpec((Kp, tn), lambda i, j: (0, j)),
        ]
        if has_bias:
            in_specs.append(pl.BlockSpec((1, tn), lambda i, j: (0, j)))
        out_spec = pl.BlockSpec((tm, tn), lambda i, j: (i, j))
        kernel = functools.partial(_mm_single_kernel, relu=relu, has_bias=has_bias)
        scratch = []
        sem = ("parallel", "parallel")

    if has_bias:
        bias_p = bias.astype(jnp.float32).reshape(1, N)
        if Np != N:
            bias_p = jnp.pad(bias_p, ((0, 0), (0, Np - N)))
        args.append(bias_p)

    out = pl.pallas_call(
        kernel,
        out_shape=jax.ShapeDtypeStruct((Mp, Np), out_dtype),
        grid_spec=pltpu.PrefetchScalarGridSpec(
            num_scalar_prefetch=0,
            grid=grid,
            in_specs=in_specs,
            out_specs=out_spec,
            scratch_shapes=scratch),
        compiler_params=pltpu.CompilerParams(
            dimension_semantics=sem, vmem_limit_bytes=VMEM_LIMIT),
    )(*args)
    if Mp != M or Np != N:
        out = out[:M, :N]
    return out


# ---------------------------------------------------------------------------
# "Wide" padded flat layout helpers (stride-1 conv chains)
#
# A wide array has shape (N, RPHYS, C); pixel (h, w) lives at flat row
# off + h*wp + w (wp = W+2); every other row in [0, Mp) is exactly zero, and
# rows [Mp, RPHYS) are never read as halo.  Each stride-1 conv consumes offset
# `off_in` and produces offset `off_out = off_in - (wp+1)` in the SAME buffer
# geometry, so whole BasicBlock chains stay in this layout with no HBM repacking.
# ---------------------------------------------------------------------------

def make_geom(H, W, n_chain):
    wp = W + 2
    shift = wp + 1
    off0 = n_chain * shift
    need = off0 + (H + 1) * wp          # covers all valid pixels + consumer halo reads
    if need <= 4096:
        tm = _round_up(need, 8)
        Mp = tm
    else:
        tm = 1024
        Mp = _round_up(need, tm)
    rphys = Mp + 2 * wp + 2             # kernel reads reach Mp-1 + 2*wp + 2
    return dict(H=H, W=W, wp=wp, shift=shift, off0=off0, tm=tm, Mp=Mp, rphys=rphys)


def to_wide(x_nhwc, off, geom):
    N, H, W, C = x_nhwc.shape
    wp = geom["wp"]
    xw = jnp.pad(x_nhwc.astype(jnp.bfloat16), ((0, 0), (0, 0), (0, wp - W), (0, 0)))
    xw = xw.reshape(N, H * wp, C)
    return jnp.pad(xw, ((0, 0), (off, geom["rphys"] - off - H * wp), (0, 0)))


def from_wide(xw, off, H, W, C):
    N = xw.shape[0]
    wp = W + 2
    return xw[:, off:off + H * wp, :].reshape(N, H, wp, C)[:, :, :W, :]


def _row_mask(geom, off_out):
    q = jnp.arange(geom["Mp"], dtype=jnp.int32) - off_out
    ok = (q >= 0) & (q < geom["H"] * geom["wp"]) & ((q % geom["wp"]) < geom["W"])
    return ok.astype(jnp.float32)[:, None]


def conv3x3_wide(xw, w_hwio, geom, *, off_in, relu=True, residual=None, res_off=None):
    """3x3 / stride 1 / pad 1 conv (BN folded) in wide layout; optional fused
    residual add + ReLU.  Returns a wide-layout array at offset off_in - (wp+1)."""
    N, rphys, cin = xw.shape
    kh, kw, cin2, cout = w_hwio.shape
    assert (kh, kw) == (3, 3) and cin == cin2
    wp, tm, Mp = geom["wp"], geom["tm"], geom["Mp"]
    off_out = off_in - geom["shift"]

    # Fold eval-mode BN (gamma=1, beta=0, mean=0, var=1) into the weights; the 3 kw
    # taps are concatenated along K so the kernel does 3 dots of depth 3*cin.
    scale = 1.0 / math.sqrt(1.0 + BN_EPS)
    w3 = (w_hwio * scale).reshape(3, 3 * cin, cout).astype(jnp.bfloat16)
    mask = _row_mask(geom, off_out)

    has_res = residual is not None
    res_shift = (res_off - off_out) if has_res else 0
    assert res_shift >= 0

    in_specs = [
        pl.BlockSpec((1, rphys, cin), lambda n, m: (n, 0, 0)),       # resident image
        pl.BlockSpec((3, 3 * cin, cout), lambda n, m: (0, 0, 0)),    # resident weights
        pl.BlockSpec((tm, 1), lambda n, m: (m, 0)),                  # row validity mask
    ]
    args = [xw, w3, mask]
    if has_res:
        in_specs.append(
            pl.BlockSpec((1, residual.shape[1], cout), lambda n, m: (n, 0, 0)))
        args.append(residual)

    out = pl.pallas_call(
        functools.partial(_conv3x3_wide_kernel, wp=wp, tm=tm, relu=relu,
                          has_residual=has_res, res_shift=res_shift,
                          single_m=(Mp == tm)),
        out_shape=jax.ShapeDtypeStruct((N, rphys, cout), jnp.bfloat16),
        grid_spec=pltpu.PrefetchScalarGridSpec(
            num_scalar_prefetch=0,
            grid=(N, Mp // tm),
            in_specs=in_specs,
            out_specs=pl.BlockSpec((1, tm, cout), lambda n, m: (n, m, 0)),
        ),
        compiler_params=pltpu.CompilerParams(
            dimension_semantics=("parallel", "parallel"),
            vmem_limit_bytes=VMEM_LIMIT),
    )(*args)
    return out


# ---------------------------------------------------------------------------
# Strided convs (im2col / slice + matmul path) and pooling
# ---------------------------------------------------------------------------

def _im2col(x, kh, kw, stride, pad):
    N, H, W, C = x.shape
    Ho = (H + 2 * pad - kh) // stride + 1
    Wo = (W + 2 * pad - kw) // stride + 1
    xp = jnp.pad(x, ((0, 0), (pad, pad), (pad, pad), (0, 0)))
    cols = []
    for i in range(kh):
        for j in range(kw):
            cols.append(xp[:, i:i + stride * (Ho - 1) + 1:stride,
                           j:j + stride * (Wo - 1) + 1:stride, :])
    patches = jnp.stack(cols, axis=3)                  # (N,Ho,Wo,kh*kw,C)
    patches = patches.reshape(N * Ho * Wo, kh * kw * C)
    return patches, (N, Ho, Wo)


def conv_bn_im2col(x, w_hwio, stride, pad, relu):
    """Strided conv (7x7 s2 stem / 3x3 s2) + folded BN (+ optional ReLU)."""
    kh, kw, cin, cout = w_hwio.shape
    patches, (N, Ho, Wo) = _im2col(x, kh, kw, stride, pad)
    scale = 1.0 / math.sqrt(1.0 + BN_EPS)
    wmat = (w_hwio * scale).reshape(kh * kw * cin, cout)
    y = matmul_bias_act(patches, wmat, bias=None, relu=relu, out_dtype=jnp.bfloat16)
    return y.reshape(N, Ho, Wo, cout)


def conv1x1_bn(x, w_hwio, stride):
    """1x1 strided conv + folded BN (downsample path): slice + matmul."""
    _, _, cin, cout = w_hwio.shape
    xs = x[:, ::stride, ::stride, :]
    N, Ho, Wo, _ = xs.shape
    scale = 1.0 / math.sqrt(1.0 + BN_EPS)
    wmat = (w_hwio * scale).reshape(cin, cout)
    y = matmul_bias_act(xs.reshape(N * Ho * Wo, cin), wmat, bias=None,
                        relu=False, out_dtype=jnp.bfloat16)
    return y.reshape(N, Ho, Wo, cout)


def maxpool_3x3_s2_p1(x):
    N, H, W, C = x.shape
    Ho = (H + 2 - 3) // 2 + 1
    Wo = (W + 2 - 3) // 2 + 1
    xp = jnp.pad(x, ((0, 0), (1, 1), (1, 1), (0, 0)), constant_values=-jnp.inf)
    wins = [xp[:, i:i + 2 * (Ho - 1) + 1:2, j:j + 2 * (Wo - 1) + 1:2, :]
            for i in range(3) for j in range(3)]
    stacked = jnp.stack(wins, axis=0).reshape(9, N * Ho * Wo, C)

    M = N * Ho * Wo
    # Lane-dense: fold pixel pairs into lanes when C < 128 (unmasked vst).
    if C < 128 and (M * C) % 128 == 0:
        C2 = 128
        M2 = M * C // 128
        stacked = stacked.reshape(9, M2, C2)
    else:
        M2, C2 = M, C

    if M2 <= 2048:
        Mp = _round_up(M2, 8)
        tm = Mp
    else:
        tm = 1024
        Mp = _round_up(M2, tm)
    if Mp != M2:
        stacked = jnp.pad(stacked, ((0, 0), (0, Mp - M2), (0, 0)))

    out = pl.pallas_call(
        _max9_kernel,
        out_shape=jax.ShapeDtypeStruct((Mp, C2), x.dtype),
        grid_spec=pltpu.PrefetchScalarGridSpec(
            num_scalar_prefetch=0,
            grid=(Mp // tm,),
            in_specs=[pl.BlockSpec((9, tm, C2), lambda m: (0, m, 0))],
            out_specs=pl.BlockSpec((tm, C2), lambda m: (m, 0)),
        ),
        compiler_params=pltpu.CompilerParams(
            dimension_semantics=("parallel",),
            vmem_limit_bytes=VMEM_LIMIT),
    )(stacked)
    return out[:M2].reshape(N, Ho, Wo, C)


def global_avg_pool(x):
    N, H, W, C = x.shape
    x3 = x.reshape(N, H * W, C)
    out = pl.pallas_call(
        _gavg_kernel,
        out_shape=jax.ShapeDtypeStruct((N, 1, C), jnp.float32),
        grid_spec=pltpu.PrefetchScalarGridSpec(
            num_scalar_prefetch=0,
            grid=(N,),
            in_specs=[pl.BlockSpec((1, H * W, C), lambda n: (n, 0, 0))],
            out_specs=pl.BlockSpec((1, 1, C), lambda n: (n, 0, 0)),
        ),
        compiler_params=pltpu.CompilerParams(
            dimension_semantics=("parallel",),
            vmem_limit_bytes=VMEM_LIMIT),
    )(x3)
    return out.reshape(N, C)


# ---------------------------------------------------------------------------
# Parameter init (deterministic, mirrors PyTorch __init__ shapes)
# ---------------------------------------------------------------------------

def _kaiming_conv(key, kh, kw, cin, cout):
    # kaiming_normal_, mode='fan_out', nonlinearity='relu'
    std = math.sqrt(2.0 / (cout * kh * kw))
    return jax.random.normal(key, (kh, kw, cin, cout), jnp.float32) * std


def init_resnet18_params(key, num_classes=10):
    keys = iter(jax.random.split(key, 64))
    params = {"stem": _kaiming_conv(next(keys), 7, 7, 3, 64)}
    inplanes = 64
    stages = []
    for planes, stride0, nblocks in zip((64, 128, 256, 512),
                                        (1, 2, 2, 2), (2, 2, 2, 2)):
        blocks = []
        for bi in range(nblocks):
            stride = stride0 if bi == 0 else 1
            blk = {
                "stride": stride,
                "w1": _kaiming_conv(next(keys), 3, 3, inplanes, planes),
                "w2": _kaiming_conv(next(keys), 3, 3, planes, planes),
            }
            if stride != 1 or inplanes != planes:
                blk["wd"] = _kaiming_conv(next(keys), 1, 1, inplanes, planes)
            blocks.append(blk)
            inplanes = planes
        stages.append(blocks)
    params["stages"] = stages
    bound = 1.0 / math.sqrt(512)
    params["fc_w"] = jax.random.uniform(next(keys), (512, num_classes),
                                        jnp.float32, -bound, bound)
    params["fc_b"] = jax.random.uniform(next(keys), (num_classes,),
                                        jnp.float32, -bound, bound)
    return params


# ---------------------------------------------------------------------------
# Forward pass (ResNet._forward_impl, BasicBlock semantics)
# ---------------------------------------------------------------------------

def resnet18_forward(params, x_nchw):
    # NCHW -> NHWC, bf16 activations end-to-end (f32 accumulation in kernels).
    x = jnp.transpose(x_nchw, (0, 2, 3, 1)).astype(jnp.bfloat16)

    # stem: conv7x7 s2 p3 -> BN -> ReLU -> maxpool 3x3 s2 p1
    x = conv_bn_im2col(x, params["stem"], stride=2, pad=3, relu=True)
    x = maxpool_3x3_s2_p1(x)

    # residual stages (BasicBlock).  Every chain of stride-1 convs in a stage runs
    # in the wide layout; add+ReLU is fused into conv2's epilogue.
    for blocks in params["stages"]:
        stride0 = blocks[0]["stride"]
        if stride0 != 1:
            # Block 0: strided conv1 + downsample use the im2col / slice paths, then
            # the rest of the stage stays in wide layout.
            n_chain = 2 * len(blocks) - 1
            y = conv_bn_im2col(x, blocks[0]["w1"], stride=stride0, pad=1, relu=True)
            _, H, W, planes = y.shape
            geom = make_geom(H, W, n_chain)
            cur_off = geom["off0"]
            xw = to_wide(y, cur_off, geom)
            idn = conv1x1_bn(x, blocks[0]["wd"], stride0)
            res_off = cur_off - geom["shift"]
            res_w = to_wide(idn, res_off, geom)
            xw = conv3x3_wide(xw, blocks[0]["w2"], geom, off_in=cur_off, relu=True,
                              residual=res_w, res_off=res_off)
            cur_off -= geom["shift"]
            rest = blocks[1:]
        else:
            n_chain = 2 * len(blocks)
            _, H, W, planes = x.shape
            geom = make_geom(H, W, n_chain)
            cur_off = geom["off0"]
            xw = to_wide(x, cur_off, geom)
            rest = blocks

        for blk in rest:
            blk_in_w, blk_in_off = xw, cur_off
            xw = conv3x3_wide(xw, blk["w1"], geom, off_in=cur_off, relu=True)
            cur_off -= geom["shift"]
            xw = conv3x3_wide(xw, blk["w2"], geom, off_in=cur_off, relu=True,
                              residual=blk_in_w, res_off=blk_in_off)
            cur_off -= geom["shift"]

        x = from_wide(xw, cur_off, H, W, planes)

    # adaptive avg pool (1,1) -> flatten -> fc
    feat = global_avg_pool(x)                     # (N, 512) f32
    logits = matmul_bias_act(feat, params["fc_w"], params["fc_b"],
                             relu=False, out_dtype=jnp.float32)
    return logits


# ---------------------------------------------------------------------------
# Demo
# ---------------------------------------------------------------------------

if __name__ == "__main__":
    key = jax.random.PRNGKey(0)
    pkey, xkey = jax.random.split(key)
    params = init_resnet18_params(pkey, num_classes=10)

    # small input consistent with the module's NCHW conv stem (3 channels)
    x = jax.random.normal(xkey, (2, 3, 32, 32), jnp.float32)

    logits = resnet18_forward(params, x)
    logits = jax.block_until_ready(logits)

    assert logits.shape == (2, 10), logits.shape
    assert bool(jnp.all(jnp.isfinite(logits)))
    print("KERNEL_OK")
</pallas_src>

<mosaic_0001>
module attributes {stable_mosaic.version = 11 : i64} {
  func.func @_mm_single_kernel(%arg0: i32, %arg1: i32, %arg2: memref<512x160xbf16, #tpu.memory_space<vmem>>, %arg3: memref<160x64xbf16, #tpu.memory_space<vmem>>, %arg4: memref<512x64xbf16, #tpu.memory_space<vmem>>) attributes {dimension_semantics = [#tpu.dimension_semantics<parallel>, #tpu.dimension_semantics<parallel>], iteration_bounds = array<i64: 1, 1>, scalar_prefetch = 0 : i64, scratch_operands = 0 : i64, tpu.core_type = #tpu.core_type<tc>, window_params = [{transform_indices = @transform_0, window_bounds = array<i64: 512, 160>}, {transform_indices = @transform_1, window_bounds = array<i64: 160, 64>}, {transform_indices = @transform_2, window_bounds = array<i64: 512, 64>}]} {
    %c0 = arith.constant 0 : index
    %c0_0 = arith.constant 0 : index
    %0 = vector.load %arg2[%c0, %c0_0] : memref<512x160xbf16, #tpu.memory_space<vmem>>, vector<512x160xbf16>
    %c0_1 = arith.constant 0 : index
    %c0_2 = arith.constant 0 : index
    %1 = vector.load %arg3[%c0_1, %c0_2] : memref<160x64xbf16, #tpu.memory_space<vmem>>, vector<160x64xbf16>
    %cst = arith.constant dense<0.000000e+00> : vector<512x64xf32>
    %2 = tpu.matmul %0, %1, %cst {dimension_numbers = #tpu.dot_dimension_numbers<[1], [0], [0], [1], [0, 0, 1, 1], [], []>} : vector<512x160xbf16>, vector<160x64xbf16>, vector<512x64xf32> -> vector<512x64xf32>
    %cst_3 = arith.constant 0.000000e+00 : f32
    %3 = vector.broadcast %cst_3 : f32 to vector<512x64xf32>
    %4 = arith.maximumf %2, %3 : vector<512x64xf32>
    %5 = arith.truncf %4 : vector<512x64xf32> to vector<512x64xbf16>
    %c0_4 = arith.constant 0 : index
    %c0_5 = arith.constant 0 : index
    %6 = vector.load %arg4[%c0_4, %c0_5] : memref<512x64xbf16, #tpu.memory_space<vmem>>, vector<512x64xbf16>
    tpu.vector_store %arg4[%c0_4, %c0_5], %5 {strides = array<i32>} : memref<512x64xbf16, #tpu.memory_space<vmem>>, vector<512x64xbf16>,
    return
  }
  func.func @transform_0(%arg0: i32, %arg1: i32) -> (i32, i32) {
    %c0_i32 = arith.constant 0 : i32
    %c0_i32_0 = arith.constant 0 : i32
    return %arg0, %c0_i32 : i32, i32
  }
  func.func @transform_1(%arg0: i32, %arg1: i32) -> (i32, i32) {
    %c0_i32 = arith.constant 0 : i32
    %c0_i32_0 = arith.constant 0 : i32
    return %c0_i32, %arg1 : i32, i32
  }
  func.func @transform_2(%arg0: i32, %arg1: i32) -> (i32, i32) {
    %c0_i32 = arith.constant 0 : i32
    return %arg0, %arg1 : i32, i32
  }
}

</mosaic_0001>

<bundles_post_ra>
// kernel: tpu_custom_call.1
= control target key start
LH: loop header
LB: loop body
LE: loop exit
PB: predicated region body
PF: predicated region fallthrough
CT: control target
= control target key end

     0   :  { %v1580_v0 = vmov 0   ;;  %vm444_vm0 = vcmask 261120   ;;  %vm1150_vm1 = vcmask 519168   ;;  %s2106_s1 = inlined_call_operand.vmem [shape: bf16[160,64], index: 1, kind: input, shape index: {}]   ;;  %s2107_s0 = inlined_call_operand.vmem [shape: bf16[512,160], index: 0, kind: input, shape index: {}]   ;;  %s2108_s2 = inlined_call_operand.vmem [shape: bf16[512,64], index: 2, kind: output, shape index: {}]  }
   0x1   :  { %541 = vmatprep.subr.bf16.mxu0 %v1580_v0  ;;  %1453 = vmatprep.subr.bf16.mxu1 %v1580_v0  ;;  %v1474_v1 = vld [vmem:[%s2106_s1] sm:$0xff]   ;;  %v1475_v2 = vld [vmem:[%s2106_s1 + $0x8] sm:$0xff]   ;;  %v1476_v3 = vld [vmem:[%s2106_s1 + $0x10] sm:$0xff]  }
   0x2   :  { %542 = vmatpush1.bf16.msra.mxu0 %v1474_v1  ;;  %1463 = vmatpush1.bf16.msra.mxu1 %v1474_v1  ;;  %v1477_v4 = vld [vmem:[%s2106_s1 + $0x18] sm:$0xff]   ;;  %v1486_v5 = vld [vmem:[%s2107_s0 + $0x4] ss:$8 sps:$4 sm:$0xff]   ;;  %v1480_v9 = vld [vmem:[%s2106_s1 + $0x30] sm:$0xff]  }
   0x3   :  { %543 = vmatprep.subr.bf16.mxu0 %v1580_v0  ;;  %1454 = vmatprep.subr.bf16.mxu1 %v1580_v0  ;;  %v1489_v6 = vld [vmem:[%s2107_s0 + $0x104] ss:$8 sps:$4 sm:$0xff]   ;;  %v1481_v10 = vld [vmem:[%s2106_s1 + $0x38] sm:$0xff]   ;;  %v1484_v13 = vld [vmem:[%s2107_s0] ss:$8 sps:$4 sm:$0xff]  }
   0x4   :  { %1293 = vmatprep.mubr.msk.bf16.mxu0 %vm444_vm0, %v1486_v5  ;;  %v1478_v7 = vld [vmem:[%s2106_s1 + $0x20] sm:$0xff]   ;;  %1309 = vmatprep.mubr.msk.bf16.mxu1 %vm444_vm0, %v1489_v6  ;;  %v1479_v8 = vld [vmem:[%s2106_s1 + $0x28] sm:$0xff]   ;;  %v1490_v15 = vld [vmem:[%s2107_s0 + $0x14] ss:$8 sps:$4 sm:$0xff]  }
   0x5   :  { %v1482_v11 = vld [vmem:[%s2106_s1 + $0x40] sm:$0xff]   ;;  %v1483_v12 = vld [vmem:[%s2106_s1 + $0x48] sm:$0xff]   ;;  %v1492_v16 = vld [vmem:[%s2107_s0 + $0x114] ss:$8 sps:$4 sm:$0xff]  }
   0x6   :  { %544 = vmatpush1.bf16.msra.mxu0 %v1475_v2  ;;  %1464 = vmatpush1.bf16.msra.mxu1 %v1475_v2  ;;  %v1487_v14 = vld [vmem:[%s2107_s0 + $0x100] ss:$8 sps:$4 sm:$0xff]   ;;  %v1494_v17 = vld [vmem:[%s2107_s0 + $0x10] ss:$8 sps:$4 sm:$0xff]   ;;  %v1496_v19 = vld [vmem:[%s2107_s0 + $0x24] ss:$8 sps:$4 sm:$0xff]  }
   0x7   :  { %545 = vmatprep.subr.bf16.mxu0 %v1580_v0  ;;  %1455 = vmatprep.subr.bf16.mxu1 %v1580_v0  ;;  %v1495_v18 = vld [vmem:[%s2107_s0 + $0x110] ss:$8 sps:$4 sm:$0xff]   ;;  %v1498_v20 = vld [vmem:[%s2107_s0 + $0x124] ss:$8 sps:$4 sm:$0xff]   ;;  %v1500_v21 = vld [vmem:[%s2107_s0 + $0x20] ss:$8 sps:$4 sm:$0xff]  }
   0x8   :  { %v1501_v22 = vld [vmem:[%s2107_s0 + $0x120] ss:$8 sps:$4 sm:$0xff]   ;;  %v1502_v23 = vld [vmem:[%s2107_s0 + $0x34] ss:$8 sps:$4 sm:$0xff]   ;;  %v1506_v25 = vld [vmem:[%s2107_s0 + $0x30] ss:$8 sps:$4 sm:$0xff]  }
   0x9   :  { %v1504_v24 = vld [vmem:[%s2107_s0 + $0x134] ss:$8 sps:$4 sm:$0xff]   ;;  %v1507_v26 = vld [vmem:[%s2107_s0 + $0x130] ss:$8 sps:$4 sm:$0xff]   ;;  %v1508_v27 = vld [vmem:[%s2107_s0 + $0x44] ss:$8 sps:$4 sm:$0xff]  }
   0xa   :  { %546 = vmatpush1.bf16.msra.mxu0 %v1476_v3  ;;  %1465 = vmatpush1.bf16.msra.mxu1 %v1476_v3  ;;  %v1510_v28 = vld [vmem:[%s2107_s0 + $0x144] ss:$8 sps:$4 sm:$0xff]   ;;  %v1512_v29 = vld [vmem:[%s2107_s0 + $0x40] ss:$8 sps:$4 sm:$0xff]   ;;  %v1514_v31 = vld [vmem:[%s2107_s0 + $0x54] ss:$8 sps:$4 sm:$0xff]  }
   0xb   :  { %547 = vmatprep.subr.bf16.mxu0 %v1580_v0  ;;  %1456 = vmatprep.subr.bf16.mxu1 %v1580_v0  ;;  %v1513_v30 = vld [vmem:[%s2107_s0 + $0x140] ss:$8 sps:$4 sm:$0xff]   ;;  %v1516_v32 = vld [vmem:[%s2107_s0 + $0x154] ss:$8 sps:$4 sm:$0xff]   ;;  %v1518_v33 = vld [vmem:[%s2107_s0 + $0x50] ss:$8 sps:$4 sm:$0xff]  }
   0xc   :  { %v1519_v34 = vld [vmem:[%s2107_s0 + $0x150] ss:$8 sps:$4 sm:$0xff]   ;;  %v1520_v35 = vld [vmem:[%s2107_s0 + $0x64] ss:$8 sps:$4 sm:$0xff]   ;;  %v1524_v37 = vld [vmem:[%s2107_s0 + $0x60] ss:$8 sps:$4 sm:$0xff]  }
   0xd   :  { %v1522_v36 = vld [vmem:[%s2107_s0 + $0x164] ss:$8 sps:$4 sm:$0xff]   ;;  %v1525_v38 = vld [vmem:[%s2107_s0 + $0x160] ss:$8 sps:$4 sm:$0xff]   ;;  %v1526_v39 = vld [vmem:[%s2107_s0 + $0x74] ss:$8 sps:$4 sm:$0xff]  }
   0xe   :  { %548 = vmatpush1.bf16.msra.mxu0 %v1477_v4  ;;  %1466 = vmatpush1.bf16.msra.mxu1 %v1477_v4  ;;  %v1528_v40 = vld [vmem:[%s2107_s0 + $0x174] ss:$8 sps:$4 sm:$0xff]   ;;  %v1530_v41 = vld [vmem:[%s2107_s0 + $0x70] ss:$8 sps:$4 sm:$0xff]   ;;  %v1532_v43 = vld [vmem:[%s2107_s0 + $0x84] ss:$8 sps:$4 sm:$0xff]  }
   0xf   :  { %549 = vmatprep.subr.bf16.mxu0 %v1580_v0  ;;  %1457 = vmatprep.subr.bf16.mxu1 %v1580_v0  ;;  %v1531_v42 = vld [vmem:[%s2107_s0 + $0x170] ss:$8 sps:$4 sm:$0xff]   ;;  %v1534_v44 = vld [vmem:[%s2107_s0 + $0x184] ss:$8 sps:$4 sm:$0xff]   ;;  %v1536_v45 = vld [vmem:[%s2107_s0 + $0x80] ss:$8 sps:$4 sm:$0xff]  }
  0x10   :  { %v1537_v46 = vld [vmem:[%s2107_s0 + $0x180] ss:$8 sps:$4 sm:$0xff]   ;;  %v1538_v47 = vld [vmem:[%s2107_s0 + $0x94] ss:$8 sps:$4 sm:$0xff]   ;;  %v1542_v49 = vld [vmem:[%s2107_s0 + $0x90] ss:$8 sps:$4 sm:$0xff]  }
  0x11   :  { %v1540_v48 = vld [vmem:[%s2107_s0 + $0x194] ss:$8 sps:$4 sm:$0xff]   ;;  %v1543_v50 = vld [vmem:[%s2107_s0 + $0x190] ss:$8 sps:$4 sm:$0xff]   ;;  %v1544_v51 = vld [vmem:[%s2107_s0 + $0xa4] ss:$8 sps:$4 sm:$0xff]  }
  0x12   :  { %550 = vmatpush1.bf16.msra.mxu0 %v1478_v7  ;;  %1467 = vmatpush1.bf16.msra.mxu1 %v1478_v7  ;;  %v1546_v52 = vld [vmem:[%s2107_s0 + $0x1a4] ss:$8 sps:$4 sm:$0xff]   ;;  %v1548_v53 = vld [vmem:[%s2107_s0 + $0xa0] ss:$8 sps:$4 sm:$0xff]   ;;  %v1550_v55 = vld [vmem:[%s2107_s0 + $0xb4] ss:$8 sps:$4 sm:$0xff]  }
  0x13   :  { %551 = vmatprep.subr.bf16.mxu0 %v1580_v0  ;;  %1458 = vmatprep.subr.bf16.mxu1 %v1580_v0  ;;  %v1549_v54 = vld [vmem:[%s2107_s0 + $0x1a0] ss:$8 sps:$4 sm:$0xff]   ;;  %v1552_v56 = vld [vmem:[%s2107_s0 + $0x1b4] ss:$8 sps:$4 sm:$0xff]   ;;  %v1554_v57 = vld [vmem:[%s2107_s0 + $0xb0] ss:$8 sps:$4 sm:$0xff]  }
  0x14   :  { %v1555_v58 = vld [vmem:[%s2107_s0 + $0x1b0] ss:$8 sps:$4 sm:$0xff]   ;;  %v1556_v59 = vld [vmem:[%s2107_s0 + $0xc4] ss:$8 sps:$4 sm:$0xff]   ;;  %v1560_v61 = vld [vmem:[%s2107_s0 + $0xc0] ss:$8 sps:$4 sm:$0xff]  }
  0x15   :  { %v1558_v60 = vld [vmem:[%s2107_s0 + $0x1c4] ss:$8 sps:$4 sm:$0xff]   ;;  %v1561_v62 = vld [vmem:[%s2107_s0 + $0x1c0] ss:$8 sps:$4 sm:$0xff]   ;;  %v1562_v63 = vld [vmem:[%s2107_s0 + $0xd4] ss:$8 sps:$4 sm:$0xff]  }
  0x16   :  { %552 = vmatpush1.bf16.msra.mxu0 %v1479_v8  ;;  %1468 = vmatpush1.bf16.msra.mxu1 %v1479_v8  ;;  %v1566_v1 = vld [vmem:[%s2107_s0 + $0xd0] ss:$8 sps:$4 sm:$0xff]   ;;  %v1568_v3 = vld [vmem:[%s2107_s0 + $0xe4] ss:$8 sps:$4 sm:$0xff]   ;;  %v1572_v5 = vld [vmem:[%s2107_s0 + $0xe0] ss:$8 sps:$4 sm:$0xff]  }
  0x17   :  { %553 = vmatprep.subr.bf16.mxu0 %v1580_v0  ;;  %1459 = vmatprep.subr.bf16.mxu1 %v1580_v0  ;;  %v1567_v2 = vld [vmem:[%s2107_s0 + $0x1d0] ss:$8 sps:$4 sm:$0xff]   ;;  %v1570_v4 = vld [vmem:[%s2107_s0 + $0x1e4] ss:$8 sps:$4 sm:$0xff]   ;;  %v1573_v6 = vld [vmem:[%s2107_s0 + $0x1e0] ss:$8 sps:$4 sm:$0xff]  }
  0x18   :  { %v1574_v7 = vld [vmem:[%s2107_s0 + $0xf4] ss:$8 sps:$4 sm:$0xff]  }
  0x19   :  { %v1576_v8 = vld [vmem:[%s2107_s0 + $0x1f4] ss:$8 sps:$4 sm:$0xff]  }
  0x1a   :  { %554 = vmatpush1.bf16.msra.mxu0 %v1480_v9  ;;  %1469 = vmatpush1.bf16.msra.mxu1 %v1480_v9  ;;  %v1578_v9 = vld [vmem:[%s2107_s0 + $0xf0] ss:$8 sps:$4 sm:$0xff]  }
  0x1b   :  { %555 = vmatprep.subr.bf16.mxu0 %v1580_v0  ;;  %1460 = vmatprep.subr.bf16.mxu1 %v1580_v0 }
  0x1e   :  { %556 = vmatpush1.bf16.msra.mxu0 %v1481_v10  ;;  %1470 = vmatpush1.bf16.msra.mxu1 %v1481_v10  ;;  %v1579_v10 = vld [vmem:[%s2107_s0 + $0x1f0] ss:$8 sps:$4 sm:$0xff]  }
  0x1f   :  { %557 = vmatprep.subr.bf16.mxu0 %v1580_v0  ;;  %1461 = vmatprep.subr.bf16.mxu1 %v1580_v0 }
  0x22   :  { %558 = vmatpush1.bf16.msra.mxu0 %v1482_v11  ;;  %1471 = vmatpush1.bf16.msra.mxu1 %v1482_v11 }
  0x23   :  { %559 = vmatprep.subr.bf16.mxu0 %v1580_v0  ;;  %1462 = vmatprep.subr.bf16.mxu1 %v1580_v0  ;;  %v1564_v0 = vld [vmem:[%s2107_s0 + $0x1d4] ss:$8 sps:$4 sm:$0xff]  }
  0x26   :  { %560 = vmatpush1.bf16.msra.mxu0 %v1483_v12  ;;  %1472 = vmatpush1.bf16.msra.mxu1 %v1483_v12 }
  0x29   :  { %574 = vmatmul.mubr.bf16.vlgmr.msra.gmra.mrb[0].mxu0 %v1484_v13  ;;  %702 = vmatmul.mubr.bf16.vlgmr.msra.gmra.mrb[0].mxu1 %v1487_v14 }
  0x2a   :  { %1294 = vmatprep.mubr.msk.bf16.mxu0 %vm444_vm0, %v1490_v15  ;;  %1310 = vmatprep.mubr.msk.bf16.mxu1 %vm444_vm0, %v1492_v16 }
  0x31   :  { %582 = vmatmul.mubr.bf16.gmra.mrb[4].mxu0 %v1494_v17  ;;  %710 = vmatmul.mubr.bf16.gmra.mrb[4].mxu1 %v1495_v18 }
  0x32   :  { %1295 = vmatprep.mubr.msk.bf16.mxu0 %vm444_vm0, %v1496_v19  ;;  %1311 = vmatprep.mubr.msk.bf16.mxu1 %vm444_vm0, %v1498_v20 }
  0x39   :  { %590 = vmatmul.mubr.bf16.gmra.mrb[8].mxu0 %v1500_v21  ;;  %718 = vmatmul.mubr.bf16.gmra.mrb[8].mxu1 %v1501_v22 }
  0x3a   :  { %1296 = vmatprep.mubr.msk.bf16.mxu0 %vm444_vm0, %v1502_v23  ;;  %1312 = vmatprep.mubr.msk.bf16.mxu1 %vm444_vm0, %v1504_v24 }
  0x41   :  { %598 = vmatmul.mubr.bf16.gmra.mrb[12].mxu0 %v1506_v25  ;;  %726 = vmatmul.mubr.bf16.gmra.mrb[12].mxu1 %v1507_v26 }
  0x42   :  { %1297 = vmatprep.mubr.msk.bf16.mxu0 %vm444_vm0, %v1508_v27  ;;  %1313 = vmatprep.mubr.msk.bf16.mxu1 %vm444_vm0, %v1510_v28 }
  0x49   :  { %606 = vmatmul.mubr.bf16.gmra.mrb[16].mxu0 %v1512_v29  ;;  %734 = vmatmul.mubr.bf16.gmra.mrb[16].mxu1 %v1513_v30 }
  0x4a   :  { %1298 = vmatprep.mubr.msk.bf16.mxu0 %vm444_vm0, %v1514_v31  ;;  %1314 = vmatprep.mubr.msk.bf16.mxu1 %vm444_vm0, %v1516_v32 }
  0x51   :  { %614 = vmatmul.mubr.bf16.gmra.mrb[20].mxu0 %v1518_v33  ;;  %742 = vmatmul.mubr.bf16.gmra.mrb[20].mxu1 %v1519_v34 }
  0x52   :  { %1299 = vmatprep.mubr.msk.bf16.mxu0 %vm444_vm0, %v1520_v35  ;;  %1315 = vmatprep.mubr.msk.bf16.mxu1 %vm444_vm0, %v1522_v36 }
  0x59   :  { %622 = vmatmul.mubr.bf16.gmra.mrb[24].mxu0 %v1524_v37  ;;  %750 = vmatmul.mubr.bf16.gmra.mrb[24].mxu1 %v1525_v38 }
  0x5a   :  { %1300 = vmatprep.mubr.msk.bf16.mxu0 %vm444_vm0, %v1526_v39  ;;  %1316 = vmatprep.mubr.msk.bf16.mxu1 %vm444_vm0, %v1528_v40 }
  0x61   :  { %630 = vmatmul.mubr.bf16.gmra.mrb[28].mxu0 %v1530_v41  ;;  %758 = vmatmul.mubr.bf16.gmra.mrb[28].mxu1 %v1531_v42 }
  0x62   :  { %1301 = vmatprep.mubr.msk.bf16.mxu0 %vm444_vm0, %v1532_v43  ;;  %1317 = vmatprep.mubr.msk.bf16.mxu1 %vm444_vm0, %v1534_v44 }
  0x69   :  { %638 = vmatmul.mubr.bf16.gmra.mrb[32].mxu0 %v1536_v45  ;;  %766 = vmatmul.mubr.bf16.gmra.mrb[32].mxu1 %v1537_v46 }
  0x6a   :  { %1302 = vmatprep.mubr.msk.bf16.mxu0 %vm444_vm0, %v1538_v47  ;;  %1318 = vmatprep.mubr.msk.bf16.mxu1 %vm444_vm0, %v1540_v48 }
  0x71   :  { %646 = vmatmul.mubr.bf16.gmra.mrb[36].mxu0 %v1542_v49  ;;  %774 = vmatmul.mubr.bf16.gmra.mrb[36].mxu1 %v1543_v50 }
  0x72   :  { %1303 = vmatprep.mubr.msk.bf16.mxu0 %vm444_vm0, %v1544_v51  ;;  %1319 = vmatprep.mubr.msk.bf16.mxu1 %vm444_vm0, %v1546_v52 }
  0x79   :  { %654 = vmatmul.mubr.bf16.gmra.mrb[40].mxu0 %v1548_v53  ;;  %782 = vmatmul.mubr.bf16.gmra.mrb[40].mxu1 %v1549_v54 }
  0x7a   :  { %1304 = vmatprep.mubr.msk.bf16.mxu0 %vm444_vm0, %v1550_v55  ;;  %1320 = vmatprep.mubr.msk.bf16.mxu1 %vm444_vm0, %v1552_v56 }
  0x81   :  { %662 = vmatmul.mubr.bf16.gmra.mrb[44].mxu0 %v1554_v57  ;;  %790 = vmatmul.mubr.bf16.gmra.mrb[44].mxu1 %v1555_v58 }
  0x82   :  { %1305 = vmatprep.mubr.msk.bf16.mxu0 %vm444_vm0, %v1556_v59  ;;  %1321 = vmatprep.mubr.msk.bf16.mxu1 %vm444_vm0, %v1558_v60 }
  0x89   :  { %670 = vmatmul.mubr.bf16.gmra.mrb[48].mxu0 %v1560_v61  ;;  %798 = vmatmul.mubr.bf16.gmra.mrb[48].mxu1 %v1561_v62 }
  0x8a   :  { %1306 = vmatprep.mubr.msk.bf16.mxu0 %vm444_vm0, %v1562_v63  ;;  %1322 = vmatprep.mubr.msk.bf16.mxu1 %vm444_vm0, %v1564_v0 }
  0x91   :  { %678 = vmatmul.mubr.bf16.gmra.mrb[52].mxu0 %v1566_v1  ;;  %806 = vmatmul.mubr.bf16.gmra.mrb[52].mxu1 %v1567_v2 }
  0x92   :  { %1307 = vmatprep.mubr.msk.bf16.mxu0 %vm444_vm0, %v1568_v3  ;;  %1323 = vmatprep.mubr.msk.bf16.mxu1 %vm444_vm0, %v1570_v4 }
  0x99   :  { %686 = vmatmul.mubr.bf16.gmra.mrb[56].mxu0 %v1572_v5  ;;  %814 = vmatmul.mubr.bf16.gmra.mrb[56].mxu1 %v1573_v6 }
  0x9a   :  { %1308 = vmatprep.mubr.msk.bf16.mxu0 %vm444_vm0, %v1574_v7  ;;  %1324 = vmatprep.mubr.msk.bf16.mxu1 %vm444_vm0, %v1576_v8 }
  0xa1   :  { %694 = vmatmul.mubr.bf16.gmra.mrb[60].mxu0 %v1578_v9  ;;  %822 = vmatmul.mubr.bf16.gmra.mrb[60].mxu1 %v1579_v10 }
  0xfc   :  { %v575_v11 = vpop.f32.mrb[0].mxu0  ;;  %v703_v12 = vpop.f32.mrb[0].mxu1 }
  0xfd   :  { %v830_v13 = vmax.f32 %v575_v11, 0.0  ;;  %v862_v14 = vmax.f32 %v703_v12, 0.0  ;;  %v577_v15 = vpop.f32.mrb[1].mxu0  ;;  %v705_v16 = vpop.f32.mrb[1].mxu1 }
  0xfe   :  { %v578_v17 = vpop.f32.mrb[2].mxu0  ;;  %v706_v18 = vpop.f32.mrb[2].mxu1 }
  0xff   :  { %v1389_v19 = vpack.c.bf16 %v830_v13, %v830_v13  ;;  %v1421_v20 = vpack.c.bf16 %v862_v14, %v862_v14  ;;  %v831_v21 = vmax.f32 %v578_v17, 0.0  ;;  %v863_v22 = vmax.f32 %v706_v18, 0.0  ;;  %v580_v23 = vpop.f32.mrb[3].mxu0  ;;  %v708_v24 = vpop.f32.mrb[3].mxu1 }
 0x101   :  { %1151 = vst.msk [vmem:[%s2108_s2] sm:$0xf] %vm1150_vm1, %v1389_v19  ;;  %1183 = vst.msk [vmem:[%s2108_s2 + $0x80] sm:$0xf] %vm1150_vm1, %v1421_v20  ;;  %v1390_v25 = vpack.c.bf16 %v831_v21, %v831_v21  ;;  %v1422_v26 = vpack.c.bf16 %v863_v22, %v863_v22 }
 0x103   :  { %1152 = vst.msk [vmem:[%s2108_s2 + $0x4] sm:$0xf] %vm1150_vm1, %v1390_v25  ;;  %1184 = vst.msk [vmem:[%s2108_s2 + $0x84] sm:$0xf] %vm1150_vm1, %v1422_v26 }
 0x104   :  { %v583_v27 = vpop.f32.mrb[4].mxu0  ;;  %v711_v28 = vpop.f32.mrb[4].mxu1 }
 0x105   :  { %v832_v29 = vmax.f32 %v583_v27, 0.0  ;;  %v864_v30 = vmax.f32 %v711_v28, 0.0  ;;  %v585_v31 = vpop.f32.mrb[5].mxu0  ;;  %v713_v32 = vpop.f32.mrb[5].mxu1 }
 0x106   :  { %v586_v33 = vpop.f32.mrb[6].mxu0  ;;  %v714_v34 = vpop.f32.mrb[6].mxu1 }
 0x107   :  { %v1391_v35 = vpack.c.bf16 %v832_v29, %v832_v29  ;;  %v1423_v36 = vpack.c.bf16 %v864_v30, %v864_v30  ;;  %v833_v37 = vmax.f32 %v586_v33, 0.0  ;;  %v865_v38 = vmax.f32 %v714_v34, 0.0  ;;  %v588_v39 = vpop.f32.mrb[7].mxu0  ;;  %v716_v40 = vpop.f32.mrb[7].mxu1 }
 0x109   :  { %1153 = vst.msk [vmem:[%s2108_s2 + $0x8] sm:$0xf] %vm1150_vm1, %v1391_v35  ;;  %1185 = vst.msk [vmem:[%s2108_s2 + $0x88] sm:$0xf] %vm1150_vm1, %v1423_v36  ;;  %v1392_v41 = vpack.c.bf16 %v833_v37, %v833_v37  ;;  %v1424_v42 = vpack.c.bf16 %v865_v38, %v865_v38 }
 0x10b   :  { %1154 = vst.msk [vmem:[%s2108_s2 + $0xc] sm:$0xf] %vm1150_vm1, %v1392_v41  ;;  %1186 = vst.msk [vmem:[%s2108_s2 + $0x8c] sm:$0xf] %vm1150_vm1, %v1424_v42 }
 0x10c   :  { %v591_v43 = vpop.f32.mrb[8].mxu0  ;;  %v719_v44 = vpop.f32.mrb[8].mxu1 }
 0x10d   :  { %v834_v45 = vmax.f32 %v591_v43, 0.0  ;;  %v866_v46 = vmax.f32 %v719_v44, 0.0  ;;  %v593_v47 = vpop.f32.mrb[9].mxu0  ;;  %v721_v48 = vpop.f32.mrb[9].mxu1 }
 0x10e   :  { %v594_v49 = vpop.f32.mrb[10].mxu0  ;;  %v722_v50 = vpop.f32.mrb[10].mxu1 }
 0x10f   :  { %v1393_v51 = vpack.c.bf16 %v834_v45, %v834_v45  ;;  %v1425_v52 = vpack.c.bf16 %v866_v46, %v866_v46  ;;  %v835_v53 = vmax.f32 %v594_v49, 0.0  ;;  %v867_v54 = vmax.f32 %v722_v50, 0.0  ;;  %v596_v55 = vpop.f32.mrb[11].mxu0  ;;  %v724_v56 = vpop.f32.mrb[11].mxu1 }
 0x111   :  { %1155 = vst.msk [vmem:[%s2108_s2 + $0x10] sm:$0xf] %vm1150_vm1, %v1393_v51  ;;  %1187 = vst.msk [vmem:[%s2108_s2 + $0x90] sm:$0xf] %vm1150_vm1, %v1425_v52  ;;  %v1394_v57 = vpack.c.bf16 %v835_v53, %v835_v53  ;;  %v1426_v58 = vpack.c.bf16 %v867_v54, %v867_v54 }
 0x113   :  { %1156 = vst.msk [vmem:[%s2108_s2 + $0x14] sm:$0xf] %vm1150_vm1, %v1394_v57  ;;  %1188 = vst.msk [vmem:[%s2108_s2 + $0x94] sm:$0xf] %vm1150_vm1, %v1426_v58 }
 0x114   :  { %v599_v59 = vpop.f32.mrb[12].mxu0  ;;  %v727_v60 = vpop.f32.mrb[12].mxu1 }
 0x115   :  { %v836_v61 = vmax.f32 %v599_v59, 0.0  ;;  %v868_v62 = vmax.f32 %v727_v60, 0.0  ;;  %v601_v63 = vpop.f32.mrb[13].mxu0  ;;  %v729_v0 = vpop.f32.mrb[13].mxu1 }
 0x116   :  { %v602_v1 = vpop.f32.mrb[14].mxu0  ;;  %v730_v2 = vpop.f32.mrb[14].mxu1 }
 0x117   :  { %v1395_v3 = vpack.c.bf16 %v836_v61, %v836_v61  ;;  %v1427_v4 = vpack.c.bf16 %v868_v62, %v868_v62  ;;  %v837_v5 = vmax.f32 %v602_v1, 0.0  ;;  %v869_v6 = vmax.f32 %v730_v2, 0.0  ;;  %v604_v7 = vpop.f32.mrb[15].mxu0  ;;  %v732_v8 = vpop.f32.mrb[15].mxu1 }
 0x119   :  { %1157 = vst.msk [vmem:[%s2108_s2 + $0x18] sm:$0xf] %vm1150_vm1, %v1395_v3  ;;  %1189 = vst.msk [vmem:[%s2108_s2 + $0x98] sm:$0xf] %vm1150_vm1, %v1427_v4  ;;  %v1396_v9 = vpack.c.bf16 %v837_v5, %v837_v5  ;;  %v1428_v10 = vpack.c.bf16 %v869_v6, %v869_v6 }
 0x11b   :  { %1158 = vst.msk [vmem:[%s2108_s2 + $0x1c] sm:$0xf] %vm1150_vm1, %v1396_v9  ;;  %1190 = vst.msk [vmem:[%s2108_s2 + $0x9c] sm:$0xf] %vm1150_vm1, %v1428_v10 }
 0x11c   :  { %v607_v11 = vpop.f32.mrb[16].mxu0  ;;  %v735_v12 = vpop.f32.mrb[16].mxu1 }
 0x11d   :  { %v838_v13 = vmax.f32 %v607_v11, 0.0  ;;  %v870_v14 = vmax.f32 %v735_v12, 0.0  ;;  %v609_v15 = vpop.f32.mrb[17].mxu0  ;;  %v737_v16 = vpop.f32.mrb[17].mxu1 }
 0x11e   :  { %v610_v17 = vpop.f32.mrb[18].mxu0  ;;  %v738_v18 = vpop.f32.mrb[18].mxu1 }
 0x11f   :  { %v1397_v19 = vpack.c.bf16 %v838_v13, %v838_v13  ;;  %v1429_v20 = vpack.c.bf16 %v870_v14, %v870_v14  ;;  %v839_v21 = vmax.f32 %v610_v17, 0.0  ;;  %v871_v22 = vmax.f32 %v738_v18, 0.0  ;;  %v612_v23 = vpop.f32.mrb[19].mxu0  ;;  %v740_v24 = vpop.f32.mrb[19].mxu1 }
 0x121   :  { %1159 = vst.msk [vmem:[%s2108_s2 + $0x20] sm:$0xf] %vm1150_vm1, %v1397_v19  ;;  %1191 = vst.msk [vmem:[%s2108_s2 + $0xa0] sm:$0xf] %vm1150_vm1, %v1429_v20  ;;  %v1398_v25 = vpack.c.bf16 %v839_v21, %v839_v21  ;;  %v1430_v26 = vpack.c.bf16 %v871_v22, %v871_v22 }
 0x123   :  { %1160 = vst.msk [vmem:[%s2108_s2 + $0x24] sm:$0xf] %vm1150_vm1, %v1398_v25  ;;  %1192 = vst.msk [vmem:[%s2108_s2 + $0xa4] sm:$0xf] %vm1150_vm1, %v1430_v26 }
 0x124   :  { %v615_v27 = vpop.f32.mrb[20].mxu0  ;;  %v743_v28 = vpop.f32.mrb[20].mxu1 }
 0x125   :  { %v840_v29 = vmax.f32 %v615_v27, 0.0  ;;  %v872_v30 = vmax.f32 %v743_v28, 0.0  ;;  %v617_v31 = vpop.f32.mrb[21].mxu0  ;;  %v745_v32 = vpop.f32.mrb[21].mxu1 }
 0x126   :  { %v618_v33 = vpop.f32.mrb[22].mxu0  ;;  %v746_v34 = vpop.f32.mrb[22].mxu1 }
 0x127   :  { %v1399_v35 = vpack.c.bf16 %v840_v29, %v840_v29  ;;  %v1431_v36 = vpack.c.bf16 %v872_v30, %v872_v30  ;;  %v841_v37 = vmax.f32 %v618_v33, 0.0  ;;  %v873_v38 = vmax.f32 %v746_v34, 0.0  ;;  %v620_v39 = vpop.f32.mrb[23].mxu0  ;;  %v748_v40 = vpop.f32.mrb[23].mxu1 }
 0x129   :  { %1161 = vst.msk [vmem:[%s2108_s2 + $0x28] sm:$0xf] %vm1150_vm1, %v1399_v35  ;;  %1193 = vst.msk [vmem:[%s2108_s2 + $0xa8] sm:$0xf] %vm1150_vm1, %v1431_v36  ;;  %v1400_v41 = vpack.c.bf16 %v841_v37, %v841_v37  ;;  %v1432_v42 = vpack.c.bf16 %v873_v38, %v873_v38 }
 0x12b   :  { %1162 = vst.msk [vmem:[%s2108_s2 + $0x2c] sm:$0xf] %vm1150_vm1, %v1400_v41  ;;  %1194 = vst.msk [vmem:[%s2108_s2 + $0xac] sm:$0xf] %vm1150_vm1, %v1432_v42 }
 0x12c   :  { %v623_v43 = vpop.f32.mrb[24].mxu0  ;;  %v751_v44 = vpop.f32.mrb[24].mxu1 }
 0x12d   :  { %v842_v45 = vmax.f32 %v623_v43, 0.0  ;;  %v874_v46 = vmax.f32 %v751_v44, 0.0  ;;  %v625_v47 = vpop.f32.mrb[25].mxu0  ;;  %v753_v48 = vpop.f32.mrb[25].mxu1 }
 0x12e   :  { %v626_v49 = vpop.f32.mrb[26].mxu0  ;;  %v754_v50 = vpop.f32.mrb[26].mxu1 }
 0x12f   :  { %v1401_v51 = vpack.c.bf16 %v842_v45, %v842_v45  ;;  %v1433_v52 = vpack.c.bf16 %v874_v46, %v874_v46  ;;  %v843_v53 = vmax.f32 %v626_v49, 0.0  ;;  %v875_v54 = vmax.f32 %v754_v50, 0.0  ;;  %v628_v55 = vpop.f32.mrb[27].mxu0  ;;  %v756_v56 = vpop.f32.mrb[27].mxu1 }
 0x131   :  { %1163 = vst.msk [vmem:[%s2108_s2 + $0x30] sm:$0xf] %vm1150_vm1, %v1401_v51  ;;  %1195 = vst.msk [vmem:[%s2108_s2 + $0xb0] sm:$0xf] %vm1150_vm1, %v1433_v52  ;;  %v1402_v57 = vpack.c.bf16 %v843_v53, %v843_v53  ;;  %v1434_v58 = vpack.c.bf16 %v875_v54, %v875_v54 }
 0x133   :  { %1164 = vst.msk [vmem:[%s2108_s2 + $0x34] sm:$0xf] %vm1150_vm1, %v1402_v57  ;;  %1196 = vst.msk [vmem:[%s2108_s2 + $0xb4] sm:$0xf] %vm1150_vm1, %v1434_v58 }
 0x134   :  { %v631_v59 = vpop.f32.mrb[28].mxu0  ;;  %v759_v60 = vpop.f32.mrb[28].mxu1 }
 0x135   :  { %v844_v61 = vmax.f32 %v631_v59, 0.0  ;;  %v876_v62 = vmax.f32 %v759_v60, 0.0  ;;  %v633_v63 = vpop.f32.mrb[29].mxu0  ;;  %v761_v0 = vpop.f32.mrb[29].mxu1 }
 0x136   :  { %v634_v1 = vpop.f32.mrb[30].mxu0  ;;  %v762_v2 = vpop.f32.mrb[30].mxu1 }
 0x137   :  { %v1403_v3 = vpack.c.bf16 %v844_v61, %v844_v61  ;;  %v1435_v4 = vpack.c.bf16 %v876_v62, %v876_v62  ;;  %v845_v5 = vmax.f32 %v634_v1, 0.0  ;;  %v877_v6 = vmax.f32 %v762_v2, 0.0  ;;  %v636_v7 = vpop.f32.mrb[31].mxu0  ;;  %v764_v8 = vpop.f32.mrb[31].mxu1 }
 0x139   :  { %1165 = vst.msk [vmem:[%s2108_s2 + $0x38] sm:$0xf] %vm1150_vm1, %v1403_v3  ;;  %1197 = vst.msk [vmem:[%s2108_s2 + $0xb8] sm:$0xf] %vm1150_vm1, %v1435_v4  ;;  %v1404_v9 = vpack.c.bf16 %v845_v5, %v845_v5  ;;  %v1436_v10 = vpack.c.bf16 %v877_v6, %v877_v6 }
 0x13b   :  { %1166 = vst.msk [vmem:[%s2108_s2 + $0x3c] sm:$0xf] %vm1150_vm1, %v1404_v9  ;;  %1198 = vst.msk [vmem:[%s2108_s2 + $0xbc] sm:$0xf] %vm1150_vm1, %v1436_v10 }
 0x13c   :  { %v639_v11 = vpop.f32.mrb[32].mxu0  ;;  %v767_v12 = vpop.f32.mrb[32].mxu1 }
 0x13d   :  { %v846_v13 = vmax.f32 %v639_v11, 0.0  ;;  %v878_v14 = vmax.f32 %v767_v12, 0.0  ;;  %v641_v15 = vpop.f32.mrb[33].mxu0  ;;  %v769_v16 = vpop.f32.mrb[33].mxu1 }
 0x13e   :  { %v642_v17 = vpop.f32.mrb[34].mxu0  ;;  %v770_v18 = vpop.f32.mrb[34].mxu1 }
 0x13f   :  { %v1405_v19 = vpack.c.bf16 %v846_v13, %v846_v13  ;;  %v1437_v20 = vpack.c.bf16 %v878_v14, %v878_v14  ;;  %v847_v21 = vmax.f32 %v642_v17, 0.0  ;;  %v879_v22 = vmax.f32 %v770_v18, 0.0  ;;  %v644_v23 = vpop.f32.mrb[35].mxu0  ;;  %v772_v24 = vpop.f32.mrb[35].mxu1 }
 0x141   :  { %1167 = vst.msk [vmem:[%s2108_s2 + $0x40] sm:$0xf] %vm1150_vm1, %v1405_v19  ;;  %1199 = vst.msk [vmem:[%s2108_s2 + $0xc0] sm:$0xf] %vm1150_vm1, %v1437_v20  ;;  %v1406_v25 = vpack.c.bf16 %v847_v21, %v847_v21  ;;  %v1438_v26 = vpack.c.bf16 %v879_v22, %v879_v22 }
 0x143   :  { %1168 = vst.msk [vmem:[%s2108_s2 + $0x44] sm:$0xf] %vm1150_vm1, %v1406_v25  ;;  %1200 = vst.msk [vmem:[%s2108_s2 + $0xc4] sm:$0xf] %vm1150_vm1, %v1438_v26 }
 0x144   :  { %v647_v27 = vpop.f32.mrb[36].mxu0  ;;  %v775_v28 = vpop.f32.mrb[36].mxu1 }
 0x145   :  { %v848_v29 = vmax.f32 %v647_v27, 0.0  ;;  %v880_v30 = vmax.f32 %v775_v28, 0.0  ;;  %v649_v31 = vpop.f32.mrb[37].mxu0  ;;  %v777_v32 = vpop.f32.mrb[37].mxu1 }
 0x146   :  { %v650_v33 = vpop.f32.mrb[38].mxu0  ;;  %v778_v34 = vpop.f32.mrb[38].mxu1 }
 0x147   :  { %v1407_v35 = vpack.c.bf16 %v848_v29, %v848_v29  ;;  %v1439_v36 = vpack.c.bf16 %v880_v30, %v880_v30  ;;  %v849_v37 = vmax.f32 %v650_v33, 0.0  ;;  %v881_v38 = vmax.f32 %v778_v34, 0.0  ;;  %v652_v39 = vpop.f32.mrb[39].mxu0  ;;  %v780_v40 = vpop.f32.mrb[39].mxu1 }
 0x149   :  { %1169 = vst.msk [vmem:[%s2108_s2 + $0x48] sm:$0xf] %vm1150_vm1, %v1407_v35  ;;  %1201 = vst.msk [vmem:[%s2108_s2 + $0xc8] sm:$0xf] %vm1150_vm1, %v1439_v36  ;;  %v1408_v41 = vpack.c.bf16 %v849_v37, %v849_v37  ;;  %v1440_v42 = vpack.c.bf16 %v881_v38, %v881_v38 }
 0x14b   :  { %1170 = vst.msk [vmem:[%s2108_s2 + $0x4c] sm:$0xf] %vm1150_vm1, %v1408_v41  ;;  %1202 = vst.msk [vmem:[%s2108_s2 + $0xcc] sm:$0xf] %vm1150_vm1, %v1440_v42 }
 0x14c   :  { %v655_v43 = vpop.f32.mrb[40].mxu0  ;;  %v783_v44 = vpop.f32.mrb[40].mxu1 }
 0x14d   :  { %v850_v45 = vmax.f32 %v655_v43, 0.0  ;;  %v882_v46 = vmax.f32 %v783_v44, 0.0  ;;  %v657_v47 = vpop.f32.mrb[41].mxu0  ;;  %v785_v48 = vpop.f32.mrb[41].mxu1 }
 0x14e   :  { %v658_v49 = vpop.f32.mrb[42].mxu0  ;;  %v786_v50 = vpop.f32.mrb[42].mxu1 }
 0x14f   :  { %v1409_v51 = vpack.c.bf16 %v850_v45, %v850_v45  ;;  %v1441_v52 = vpack.c.bf16 %v882_v46, %v882_v46  ;;  %v851_v53 = vmax.f32 %v658_v49, 0.0  ;;  %v883_v54 = vmax.f32 %v786_v50, 0.0  ;;  %v660_v55 = vpop.f32.mrb[43].mxu0  ;;  %v788_v56 = vpop.f32.mrb[43].mxu1 }
 0x151   :  { %1171 = vst.msk [vmem:[%s2108_s2 + $0x50] sm:$0xf] %vm1150_vm1, %v1409_v51  ;;  %1203 = vst.msk [vmem:[%s2108_s2 + $0xd0] sm:$0xf] %vm1150_vm1, %v1441_v52  ;;  %v1410_v57 = vpack.c.bf16 %v851_v53, %v851_v53  ;;  %v1442_v58 = vpack.c.bf16 %v883_v54, %v883_v54 }
 0x153   :  { %1172 = vst.msk [vmem:[%s2108_s2 + $0x54] sm:$0xf] %vm1150_vm1, %v1410_v57  ;;  %1204 = vst.msk [vmem:[%s2108_s2 + $0xd4] sm:$0xf] %vm1150_vm1, %v1442_v58 }
 0x154   :  { %v663_v59 = vpop.f32.mrb[44].mxu0  ;;  %v791_v60 = vpop.f32.mrb[44].mxu1 }
 0x155   :  { %v852_v61 = vmax.f32 %v663_v59, 0.0  ;;  %v884_v62 = vmax.f32 %v791_v60, 0.0  ;;  %v665_v63 = vpop.f32.mrb[45].mxu0  ;;  %v793_v0 = vpop.f32.mrb[45].mxu1 }
 0x156   :  { %v666_v1 = vpop.f32.mrb[46].mxu0  ;;  %v794_v2 = vpop.f32.mrb[46].mxu1 }
 0x157   :  { %v1411_v3 = vpack.c.bf16 %v852_v61, %v852_v61  ;;  %v1443_v4 = vpack.c.bf16 %v884_v62, %v884_v62  ;;  %v853_v5 = vmax.f32 %v666_v1, 0.0  ;;  %v885_v6 = vmax.f32 %v794_v2, 0.0  ;;  %v668_v7 = vpop.f32.mrb[47].mxu0  ;;  %v796_v8 = vpop.f32.mrb[47].mxu1 }
 0x159   :  { %1173 = vst.msk [vmem:[%s2108_s2 + $0x58] sm:$0xf] %vm1150_vm1, %v1411_v3  ;;  %1205 = vst.msk [vmem:[%s2108_s2 + $0xd8] sm:$0xf] %vm1150_vm1, %v1443_v4  ;;  %v1412_v9 = vpack.c.bf16 %v853_v5, %v853_v5  ;;  %v1444_v10 = vpack.c.bf16 %v885_v6, %v885_v6 }
 0x15b   :  { %1174 = vst.msk [vmem:[%s2108_s2 + $0x5c] sm:$0xf] %vm1150_vm1, %v1412_v9  ;;  %1206 = vst.msk [vmem:[%s2108_s2 + $0xdc] sm:$0xf] %vm1150_vm1, %v1444_v10 }
 0x15c   :  { %v671_v11 = vpop.f32.mrb[48].mxu0  ;;  %v799_v12 = vpop.f32.mrb[48].mxu1 }
 0x15d   :  { %v854_v13 = vmax.f32 %v671_v11, 0.0  ;;  %v886_v14 = vmax.f32 %v799_v12, 0.0  ;;  %v673_v15 = vpop.f32.mrb[49].mxu0  ;;  %v801_v16 = vpop.f32.mrb[49].mxu1 }
 0x15e   :  { %v674_v17 = vpop.f32.mrb[50].mxu0  ;;  %v802_v18 = vpop.f32.mrb[50].mxu1 }
 0x15f   :  { %v1413_v19 = vpack.c.bf16 %v854_v13, %v854_v13  ;;  %v1445_v20 = vpack.c.bf16 %v886_v14, %v886_v14  ;;  %v855_v21 = vmax.f32 %v674_v17, 0.0  ;;  %v887_v22 = vmax.f32 %v802_v18, 0.0  ;;  %v676_v23 = vpop.f32.mrb[51].mxu0  ;;  %v804_v24 = vpop.f32.mrb[51].mxu1 }
 0x161   :  { %1175 = vst.msk [vmem:[%s2108_s2 + $0x60] sm:$0xf] %vm1150_vm1, %v1413_v19  ;;  %1207 = vst.msk [vmem:[%s2108_s2 + $0xe0] sm:$0xf] %vm1150_vm1, %v1445_v20  ;;  %v1414_v25 = vpack.c.bf16 %v855_v21, %v855_v21  ;;  %v1446_v26 = vpack.c.bf16 %v887_v22, %v887_v22 }
 0x163   :  { %1176 = vst.msk [vmem:[%s2108_s2 + $0x64] sm:$0xf] %vm1150_vm1, %v1414_v25  ;;  %1208 = vst.msk [vmem:[%s2108_s2 + $0xe4] sm:$0xf] %vm1150_vm1, %v1446_v26 }
 0x164   :  { %v679_v27 = vpop.f32.mrb[52].mxu0  ;;  %v807_v28 = vpop.f32.mrb[52].mxu1 }
 0x165   :  { %v856_v29 = vmax.f32 %v679_v27, 0.0  ;;  %v888_v30 = vmax.f32 %v807_v28, 0.0  ;;  %v681_v31 = vpop.f32.mrb[53].mxu0  ;;  %v809_v32 = vpop.f32.mrb[53].mxu1 }
 0x166   :  { %v682_v33 = vpop.f32.mrb[54].mxu0  ;;  %v810_v34 = vpop.f32.mrb[54].mxu1 }
 0x167   :  { %v1415_v35 = vpack.c.bf16 %v856_v29, %v856_v29  ;;  %v1447_v36 = vpack.c.bf16 %v888_v30, %v888_v30  ;;  %v857_v37 = vmax.f32 %v682_v33, 0.0  ;;  %v889_v38 = vmax.f32 %v810_v34, 0.0  ;;  %v684_v39 = vpop.f32.mrb[55].mxu0  ;;  %v812_v40 = vpop.f32.mrb[55].mxu1 }
 0x169   :  { %1177 = vst.msk [vmem:[%s2108_s2 + $0x68] sm:$0xf] %vm1150_vm1, %v1415_v35  ;;  %1209 = vst.msk [vmem:[%s2108_s2 + $0xe8] sm:$0xf] %vm1150_vm1, %v1447_v36  ;;  %v1416_v41 = vpack.c.bf16 %v857_v37, %v857_v37  ;;  %v1448_v42 = vpack.c.bf16 %v889_v38, %v889_v38 }
 0x16b   :  { %1178 = vst.msk [vmem:[%s2108_s2 + $0x6c] sm:$0xf] %vm1150_vm1, %v1416_v41  ;;  %1210 = vst.msk [vmem:[%s2108_s2 + $0xec] sm:$0xf] %vm1150_vm1, %v1448_v42 }
 0x16c   :  { %v687_v43 = vpop.f32.mrb[56].mxu0  ;;  %v815_v44 = vpop.f32.mrb[56].mxu1 }
 0x16d   :  { %v858_v45 = vmax.f32 %v687_v43, 0.0  ;;  %v890_v46 = vmax.f32 %v815_v44, 0.0  ;;  %v689_v47 = vpop.f32.mrb[57].mxu0  ;;  %v817_v48 = vpop.f32.mrb[57].mxu1 }
 0x16e   :  { %v690_v49 = vpop.f32.mrb[58].mxu0  ;;  %v818_v50 = vpop.f32.mrb[58].mxu1 }
 0x16f   :  { %v1417_v51 = vpack.c.bf16 %v858_v45, %v858_v45  ;;  %v1449_v52 = vpack.c.bf16 %v890_v46, %v890_v46  ;;  %v859_v53 = vmax.f32 %v690_v49, 0.0  ;;  %v891_v54 = vmax.f32 %v818_v50, 0.0  ;;  %v692_v55 = vpop.f32.mrb[59].mxu0  ;;  %v820_v56 = vpop.f32.mrb[59].mxu1 }
 0x171   :  { %1179 = vst.msk [vmem:[%s2108_s2 + $0x70] sm:$0xf] %vm1150_vm1, %v1417_v51  ;;  %1211 = vst.msk [vmem:[%s2108_s2 + $0xf0] sm:$0xf] %vm1150_vm1, %v1449_v52  ;;  %v1418_v57 = vpack.c.bf16 %v859_v53, %v859_v53  ;;  %v1450_v58 = vpack.c.bf16 %v891_v54, %v891_v54 }
 0x173   :  { %1180 = vst.msk [vmem:[%s2108_s2 + $0x74] sm:$0xf] %vm1150_vm1, %v1418_v57  ;;  %1212 = vst.msk [vmem:[%s2108_s2 + $0xf4] sm:$0xf] %vm1150_vm1, %v1450_v58 }
 0x174   :  { %v695_v59 = vpop.f32.mrb[60].mxu0  ;;  %v823_v60 = vpop.f32.mrb[60].mxu1 }
 0x175   :  { %v860_v61 = vmax.f32 %v695_v59, 0.0  ;;  %v892_v62 = vmax.f32 %v823_v60, 0.0  ;;  %v697_v63 = vpop.f32.mrb[61].mxu0  ;;  %v825_v0 = vpop.f32.mrb[61].mxu1 }
 0x176   :  { %v698_v1 = vpop.f32.mrb[62].mxu0  ;;  %v826_v2 = vpop.f32.mrb[62].mxu1 }
 0x177   :  { %v1419_v3 = vpack.c.bf16 %v860_v61, %v860_v61  ;;  %v1451_v4 = vpack.c.bf16 %v892_v62, %v892_v62  ;;  %v861_v5 = vmax.f32 %v698_v1, 0.0  ;;  %v893_v6 = vmax.f32 %v826_v2, 0.0  ;;  %v700_v7 = vpop.f32.mrb[63].mxu0  ;;  %v828_v8 = vpop.f32.mrb[63].mxu1 }
 0x179   :  { %1181 = vst.msk [vmem:[%s2108_s2 + $0x78] sm:$0xf] %vm1150_vm1, %v1419_v3  ;;  %1213 = vst.msk [vmem:[%s2108_s2 + $0xf8] sm:$0xf] %vm1150_vm1, %v1451_v4  ;;  %v1420_v9 = vpack.c.bf16 %v861_v5, %v861_v5  ;;  %v1452_v10 = vpack.c.bf16 %v893_v6, %v893_v6 }
 0x17b   :  { %1182 = vst.msk [vmem:[%s2108_s2 + $0x7c] sm:$0xf] %vm1150_vm1, %v1420_v9  ;;  %1214 = vst.msk [vmem:[%s2108_s2 + $0xfc] sm:$0xf] %vm1150_vm1, %v1452_v10 }

</bundles_post_ra>
